<compile_context>
chip_gen: v7x
topology: tpu7x:2x2x1
jax: 0.10.0
libtpu: 0.0.40
codegen_flags: <defaults>
</compile_context>

<pallas_src>
import jax
import jax.numpy as jnp
from jax import lax
from jax.experimental import pallas as pl
from jax.experimental.pallas import tpu as pltpu


def attn_kernel(meta_ref, v_ref, vs_ref, scores_ref, out_ref):
    i = pl.program_id(0)
    n = meta_ref[i, 0]        # true history length for this query
    k_eff = meta_ref[i, 1]    # min(n, k), computed on the host

    v = v_ref[...]            # (1, D)
    vs = vs_ref[...]          # (Np, D)   rows >= n are padding
    scores = scores_ref[...]  # (1, Np)
    npad = vs.shape[0]
    neg_big = jnp.float32(-1e30)

    # Single canonical vs-contraction (lane-dense row).  lhs contracts its
    # last dim, rhs uses transpose_rhs -- both known-good Mosaic orientations.
    alpha = lax.dot_general(
        v, vs, (((1,), (1,)), ((), ())), preferred_element_type=jnp.float32
    )  # (1, Np)

    lane = lax.broadcasted_iota(jnp.int32, (1, npad), 1)
    valid_t = lane < n
    # Zero padded lanes so no garbage/NaN leaks into the one-hot matmul or
    # the softmax (padding is also excluded by the masks below).
    alpha = jnp.where(valid_t, alpha, jnp.float32(0.0))
    scores = jnp.where(valid_t, scores, jnp.float32(0.0))

    # One iota pair, reused for the one-hot matrix, diagonal and tie masks.
    u_i = lax.broadcasted_iota(jnp.int32, (npad, npad), 0)
    t_i = lax.broadcasted_iota(jnp.int32, (npad, npad), 1)
    diag = u_i == t_i

    # Column copy of alpha via a one-hot (1.0/0.0) matmul:
    #   alpha_col[u, 0] = sum_m eye[u, m] * alpha[0, m] = alpha[0, u]
    eye = jnp.where(diag, jnp.float32(1.0), jnp.float32(0.0))
    alpha_col = lax.dot_general(
        eye, alpha, (((1,), (1,)), ((), ())), preferred_element_type=jnp.float32
    )  # (Np, 1)

    # Vectorized rank-based top-k (no serial argmax):
    #   rank_t = #{u valid : a_u > a_t} + #{u valid, u < t : a_u == a_t}
    # selected iff rank_t < k_eff and t is a real record.
    valid_u = lax.broadcasted_iota(jnp.int32, (npad, 1), 0) < n   # (Np, 1)
    gt = (alpha_col > alpha) & jnp.logical_not(diag)
    tie = (alpha_col == alpha) & (u_i < t_i)
    sel = jnp.where((gt | tie) & valid_u, jnp.float32(1.0), jnp.float32(0.0))

    # Rank reduce on the MXU (ones @ sel) instead of an XLU sublane reduce.
    ones_row = jnp.ones((1, npad), jnp.float32)
    rank = lax.dot_general(
        ones_row, sel, (((1,), (0,)), ((), ())),
        preferred_element_type=jnp.float32,
    )  # (1, Np)

    selected = (rank < k_eff.astype(jnp.float32)) & valid_t       # (1, Np)

    # Softmax over the selected logits fused with the score gather; the
    # global valid max is always selected, so it is a safe stabilizer.
    a_sel = jnp.where(selected, alpha, neg_big)
    m = jnp.max(a_sel, axis=-1, keepdims=True)        # (1, 1)
    e = jnp.exp(a_sel - m)                            # exactly 0 off-selection
    num = jnp.sum(e * scores, axis=-1, keepdims=True)
    den = jnp.sum(e, axis=-1, keepdims=True)
    # Exact divide on purpose: pl.reciprocal(approx=True) (~2^-12 rel. error)
    # would exceed the 1e-5 check tolerance.
    score = num / den                                 # (1, 1)

    # Lane-dense (1, 128) output row -> unmasked vst; wrapper reads lane 0.
    out_ref[...] = jnp.broadcast_to(score, out_ref.shape)


def attn_scores_batched(v_b, vs_b, scores_b, lengths, k):
    """Batched AttnModel attention: B independent (v, history) queries.

    v_b: (B, D), vs_b: (B, N, D) (rows >= lengths[i] may be garbage/padding),
    scores_b: (B, N), lengths: (B,) true history lengths (>= 1), k: python int.
    Returns (B,) float32 attention scores.
    """
    v_b = jnp.asarray(v_b, jnp.float32)
    vs_b = jnp.asarray(vs_b, jnp.float32)
    scores_b = jnp.asarray(scores_b, jnp.float32)
    bsz, n, d = vs_b.shape

    # Bucket N to multiples of 128: one Mosaic compile per (bucket, B, D)
    # instead of one per call as the history grows; the true length and k_eff
    # are runtime SMEM scalars inside a bucket.
    npad = max(128, int(pl.cdiv(n, 128)) * 128)
    if npad != n:
        vs_b = jnp.pad(vs_b, ((0, 0), (0, npad - n), (0, 0)))
        scores_b = jnp.pad(scores_b, ((0, 0), (0, npad - n)))

    lengths = jnp.asarray(lengths, jnp.int32).reshape(bsz)
    k_eff = jnp.minimum(lengths, jnp.int32(k))
    meta = jnp.stack([lengths, k_eff], axis=1)               # (B, 2) -> SMEM

    v3 = v_b.reshape(bsz, 1, d)
    s3 = scores_b.reshape(bsz, 1, npad)

    # Scoped VMEM sized from the (Np, Np) intermediates; capped under v7x's
    # 64 MiB physical VMEM.
    vmem_bytes = int(min(60 * 1024 * 1024,
                         max(16 * 1024 * 1024,
                             8 * npad * npad * 4 + 4 * npad * d * 4)))

    cost = pl.CostEstimate(
        flops=bsz * (10 * npad * npad + 2 * npad * d + 8 * npad),
        transcendentals=bsz * npad,
        bytes_accessed=4 * bsz * (npad * d + d + npad + 128),
    )

    out = pl.pallas_call(
        attn_kernel,
        out_shape=jax.ShapeDtypeStruct((bsz, 1, 128), jnp.float32),
        grid_spec=pltpu.PrefetchScalarGridSpec(
            num_scalar_prefetch=1,
            grid=(bsz,),
            in_specs=[
                pl.BlockSpec((None, 1, d), lambda i, meta_ref: (i, 0, 0)),
                pl.BlockSpec((None, npad, d), lambda i, meta_ref: (i, 0, 0)),
                pl.BlockSpec((None, 1, npad), lambda i, meta_ref: (i, 0, 0)),
            ],
            out_specs=pl.BlockSpec((None, 1, 128), lambda i, meta_ref: (i, 0, 0)),
        ),
        compiler_params=pltpu.CompilerParams(
            dimension_semantics=("parallel",),   # v7x: both TensorCores
            vmem_limit_bytes=vmem_bytes,
        ),
        cost_estimate=cost,
    )(meta, v3, vs_b, s3)
    return out[:, 0, 0]


def attn_model_forward(v, h, k, initial_guess):
    """JAX/Pallas equivalent of AttnModel.forward(v, h)."""
    if h is None:
        # Trainable initial_guess, shape (1,), as in the PyTorch module.
        return initial_guess
    vs, scores = h
    n = vs.shape[0]
    out = attn_scores_batched(v[None, :], vs[None, :, :], scores[None, :],
                              jnp.array([n], jnp.int32), k)
    return out.reshape(1, 1)   # matches score.view(1, 1)


if __name__ == "__main__":
    topic_size = 32   # D (topic embedding size)
    seq_len = 8       # N (number of past exercise records in h)
    k = 4             # attention top-k

    key = jax.random.PRNGKey(0)
    kv, kvs, ks = jax.random.split(key, 3)
    v = jax.random.normal(kv, (topic_size,), jnp.float32)
    vs = jax.random.normal(kvs, (seq_len, topic_size), jnp.float32)
    scores = jax.random.normal(ks, (seq_len,), jnp.float32)
    initial_guess = jnp.zeros((1,), jnp.float32)   # from __init__

    # --- single query (module-faithful path) ---
    out = attn_model_forward(v, (vs, scores), k, initial_guess)
    out = jax.block_until_ready(out)
    assert out.shape == (1, 1)

    alpha_ref = jnp.dot(vs, v, precision=lax.Precision.HIGHEST)
    vals, idx = lax.top_k(alpha_ref, min(seq_len, k))
    ref = jnp.sum(jax.nn.softmax(vals) * scores[idx]).reshape(1, 1)
    assert jnp.allclose(out, ref, atol=1e-5, rtol=1e-5), (out, ref)

    # --- batched ragged queries (one compile, one launch, parallel grid) ---
    bsz = 4
    kq, kh, kr = jax.random.split(jax.random.PRNGKey(1), 3)
    v_bat = jax.random.normal(kq, (bsz, topic_size), jnp.float32)
    vs_bat = jax.random.normal(kh, (bsz, seq_len, topic_size), jnp.float32)
    sc_bat = jax.random.normal(kr, (bsz, seq_len), jnp.float32)
    lengths = jnp.array([3, 5, 8, 8], jnp.int32)

    out_b = jax.block_until_ready(
        attn_scores_batched(v_bat, vs_bat, sc_bat, lengths, k))
    assert out_b.shape == (bsz,)
    for i in range(bsz):
        n_i = int(lengths[i])
        a_i = jnp.dot(vs_bat[i, :n_i], v_bat[i], precision=lax.Precision.HIGHEST)
        vals_i, idx_i = lax.top_k(a_i, min(n_i, k))
        ref_i = jnp.sum(jax.nn.softmax(vals_i) * sc_bat[i, :n_i][idx_i])
        assert jnp.allclose(out_b[i], ref_i, atol=1e-5, rtol=1e-5), (
            i, out_b[i], ref_i)

    # --- h is None branch ---
    none_branch = attn_model_forward(v, None, k, initial_guess)
    assert none_branch.shape == (1,)

    print("KERNEL_OK")
</pallas_src>

<mosaic_0001>
module attributes {stable_mosaic.version = 11 : i64} {
  func.func @attn_kernel(%arg0: i32, %arg1: memref<1x2xi32, #tpu.memory_space<smem>>, %arg2: memref<1x1x32xf32, #tpu.memory_space<vmem>>, %arg3: memref<1x128x32xf32, #tpu.memory_space<vmem>>, %arg4: memref<1x1x128xf32, #tpu.memory_space<vmem>>, %arg5: memref<1x1x128xf32, #tpu.memory_space<vmem>>) attributes {dimension_semantics = [#tpu.dimension_semantics<parallel>], iteration_bounds = array<i64: 1>, scalar_prefetch = 1 : i64, scratch_operands = 0 : i64, tpu.core_type = #tpu.core_type<tc>, window_params = [{transform_indices = @transform_0, window_bounds = array<i64: 1, 1, 32>}, {transform_indices = @transform_1, window_bounds = array<i64: 1, 128, 32>}, {transform_indices = @transform_2, window_bounds = array<i64: 1, 1, 128>}, {transform_indices = @transform_3, window_bounds = array<i64: 1, 1, 128>}]} {
    %0 = arith.index_cast %arg0 : i32 to index
    %c0 = arith.constant 0 : index
    %1 = memref.load %arg1[%0, %c0] : memref<1x2xi32, #tpu.memory_space<smem>>
    %2 = arith.index_cast %arg0 : i32 to index
    %c1 = arith.constant 1 : index
    %3 = memref.load %arg1[%2, %c1] : memref<1x2xi32, #tpu.memory_space<smem>>
    %c0_0 = arith.constant 0 : index
    %c0_1 = arith.constant 0 : index
    %c0_2 = arith.constant 0 : index
    %4 = vector.load %arg2[%c0_0, %c0_1, %c0_2] : memref<1x1x32xf32, #tpu.memory_space<vmem>>, vector<1x1x32xf32>
    %5 = vector.shape_cast %4 : vector<1x1x32xf32> to vector<1x32xf32>
    %c0_3 = arith.constant 0 : index
    %c0_4 = arith.constant 0 : index
    %c0_5 = arith.constant 0 : index
    %6 = vector.load %arg3[%c0_3, %c0_4, %c0_5] : memref<1x128x32xf32, #tpu.memory_space<vmem>>, vector<1x128x32xf32>
    %7 = vector.shape_cast %6 : vector<1x128x32xf32> to vector<128x32xf32>
    %c0_6 = arith.constant 0 : index
    %c0_7 = arith.constant 0 : index
    %c0_8 = arith.constant 0 : index
    %8 = vector.load %arg4[%c0_6, %c0_7, %c0_8] : memref<1x1x128xf32, #tpu.memory_space<vmem>>, vector<1x1x128xf32>
    %9 = vector.shape_cast %8 : vector<1x1x128xf32> to vector<1x128xf32>
    %cst = arith.constant dense<0.000000e+00> : vector<1x128xf32>
    %10 = tpu.matmul %5, %7, %cst {dimension_numbers = #tpu.dot_dimension_numbers<[1], [1], [0], [0], [0, 0, 1, 0], [], []>} : vector<1x32xf32>, vector<128x32xf32>, vector<1x128xf32> -> vector<1x128xf32>
    %11 = tpu.iota {dimensions = array<i32: 1>} : vector<1x128xi32>
    %12 = vector.broadcast %1 : i32 to vector<1x128xi32>
    %13 = arith.cmpi slt, %11, %12 : vector<1x128xi32>
    %cst_9 = arith.constant 0.000000e+00 : f32
    %14 = vector.broadcast %cst_9 : f32 to vector<1x128xf32>
    %15 = arith.select %13, %10, %14 : vector<1x128xi1>, vector<1x128xf32>
    %cst_10 = arith.constant 0.000000e+00 : f32
    %16 = vector.broadcast %cst_10 : f32 to vector<1x128xf32>
    %17 = arith.select %13, %9, %16 : vector<1x128xi1>, vector<1x128xf32>
    %18 = tpu.iota {dimensions = array<i32: 0>} : vector<128x128xi32>
    %19 = tpu.iota {dimensions = array<i32: 1>} : vector<128x128xi32>
    %20 = arith.cmpi eq, %18, %19 : vector<128x128xi32>
    %cst_11 = arith.constant 1.000000e+00 : f32
    %cst_12 = arith.constant 0.000000e+00 : f32
    %21 = vector.broadcast %cst_11 : f32 to vector<128x128xf32>
    %22 = vector.broadcast %cst_12 : f32 to vector<128x128xf32>
    %23 = arith.select %20, %21, %22 : vector<128x128xi1>, vector<128x128xf32>
    %cst_13 = arith.constant dense<0.000000e+00> : vector<128x1xf32>
    %24 = tpu.matmul %23, %15, %cst_13 {dimension_numbers = #tpu.dot_dimension_numbers<[1], [1], [0], [0], [0, 0, 1, 0], [], []>} : vector<128x128xf32>, vector<1x128xf32>, vector<128x1xf32> -> vector<128x1xf32>
    %25 = tpu.iota {dimensions = array<i32: 0>} : vector<128x1xi32>
    %26 = vector.broadcast %1 : i32 to vector<128x1xi32>
    %27 = arith.cmpi slt, %25, %26 : vector<128x1xi32>
    %28 = vector.broadcast %24 : vector<128x1xf32> to vector<128x128xf32>
    %29 = vector.broadcast %15 : vector<1x128xf32> to vector<128x128xf32>
    %30 = arith.cmpf ogt, %28, %29 : vector<128x128xf32>
    %cst_14 = arith.constant dense<true> : vector<128x128xi1>
    %31 = arith.xori %20, %cst_14 : vector<128x128xi1>
    %32 = arith.andi %30, %31 : vector<128x128xi1>
    %33 = vector.broadcast %24 : vector<128x1xf32> to vector<128x128xf32>
    %34 = vector.broadcast %15 : vector<1x128xf32> to vector<128x128xf32>
    %35 = arith.cmpf oeq, %33, %34 : vector<128x128xf32>
    %36 = arith.cmpi slt, %18, %19 : vector<128x128xi32>
    %37 = arith.andi %35, %36 : vector<128x128xi1>
    %38 = arith.ori %32, %37 : vector<128x128xi1>
    %39 = vector.broadcast %27 : vector<128x1xi1> to vector<128x128xi1>
    %40 = arith.andi %38, %39 : vector<128x128xi1>
    %cst_15 = arith.constant 1.000000e+00 : f32
    %cst_16 = arith.constant 0.000000e+00 : f32
    %41 = vector.broadcast %cst_15 : f32 to vector<128x128xf32>
    %42 = vector.broadcast %cst_16 : f32 to vector<128x128xf32>
    %43 = arith.select %40, %41, %42 : vector<128x128xi1>, vector<128x128xf32>
    %cst_17 = arith.constant 1.000000e+00 : f32
    %44 = vector.broadcast %cst_17 : f32 to vector<1x128xf32>
    %cst_18 = arith.constant dense<0.000000e+00> : vector<1x128xf32>
    %45 = tpu.matmul %44, %43, %cst_18 {dimension_numbers = #tpu.dot_dimension_numbers<[1], [0], [0], [1], [0, 0, 1, 1], [], []>} : vector<1x128xf32>, vector<128x128xf32>, vector<1x128xf32> -> vector<1x128xf32>
    %46 = arith.sitofp %3 : i32 to f32
    %47 = vector.broadcast %46 : f32 to vector<1x128xf32>
    %48 = arith.cmpf olt, %45, %47 : vector<1x128xf32>
    %49 = arith.andi %48, %13 : vector<1x128xi1>
    %cst_19 = arith.constant -1.000000e+30 : f32
    %50 = vector.broadcast %cst_19 : f32 to vector<1x128xf32>
    %51 = arith.select %49, %15, %50 : vector<1x128xi1>, vector<1x128xf32>
    %cst_20 = arith.constant dense<0xFF800000> : vector<1xf32>
    %52 = vector.multi_reduction <maximumf>, %51, %cst_20 [1] : vector<1x128xf32> to vector<1xf32>
    %53 = vector.shape_cast %52 : vector<1xf32> to vector<1x1xf32>
    %54 = vector.broadcast %53 : vector<1x1xf32> to vector<1x128xf32>
    %55 = arith.subf %51, %54 : vector<1x128xf32>
    %56 = math.exp %55 : vector<1x128xf32>
    %57 = arith.mulf %56, %17 : vector<1x128xf32>
    %cst_21 = arith.constant dense<0.000000e+00> : vector<1xf32>
    %58 = vector.multi_reduction <add>, %57, %cst_21 [1] : vector<1x128xf32> to vector<1xf32>
    %59 = vector.shape_cast %58 : vector<1xf32> to vector<1x1xf32>
    %cst_22 = arith.constant dense<0.000000e+00> : vector<1xf32>
    %60 = vector.multi_reduction <add>, %56, %cst_22 [1] : vector<1x128xf32> to vector<1xf32>
    %61 = vector.shape_cast %60 : vector<1xf32> to vector<1x1xf32>
    %62 = arith.divf %59, %61 : vector<1x1xf32>
    %63 = vector.shape_cast %62 : vector<1x1xf32> to vector<1x1xf32>
    %64 = vector.broadcast %63 : vector<1x1xf32> to vector<1x128xf32>
    %c0_23 = arith.constant 0 : index
    %c0_24 = arith.constant 0 : index
    %c0_25 = arith.constant 0 : index
    %65 = vector.load %arg5[%c0_23, %c0_24, %c0_25] : memref<1x1x128xf32, #tpu.memory_space<vmem>>, vector<1x1x128xf32>
    %66 = vector.shape_cast %65 : vector<1x1x128xf32> to vector<1x128xf32>
    %67 = vector.shape_cast %64 : vector<1x128xf32> to vector<1x1x128xf32>
    tpu.vector_store %arg5[%c0_23, %c0_24, %c0_25], %67 {strides = array<i32>} : memref<1x1x128xf32, #tpu.memory_space<vmem>>, vector<1x1x128xf32>,
    return
  }
  func.func @transform_0(%arg0: i32, %arg1: memref<1x2xi32, #tpu.memory_space<smem>>) -> (i32, i32, i32) {
    %c0_i32 = arith.constant 0 : i32
    %c0_i32_0 = arith.constant 0 : i32
    %c0_i32_1 = arith.constant 0 : i32
    return %arg0, %c0_i32, %c0_i32_0 : i32, i32, i32
  }
  func.func @transform_1(%arg0: i32, %arg1: memref<1x2xi32, #tpu.memory_space<smem>>) -> (i32, i32, i32) {
    %c0_i32 = arith.constant 0 : i32
    %c0_i32_0 = arith.constant 0 : i32
    %c0_i32_1 = arith.constant 0 : i32
    return %arg0, %c0_i32, %c0_i32_0 : i32, i32, i32
  }
  func.func @transform_2(%arg0: i32, %arg1: memref<1x2xi32, #tpu.memory_space<smem>>) -> (i32, i32, i32) {
    %c0_i32 = arith.constant 0 : i32
    %c0_i32_0 = arith.constant 0 : i32
    %c0_i32_1 = arith.constant 0 : i32
    return %arg0, %c0_i32, %c0_i32_0 : i32, i32, i32
  }
  func.func @transform_3(%arg0: i32, %arg1: memref<1x2xi32, #tpu.memory_space<smem>>) -> (i32, i32, i32) {
    %c0_i32 = arith.constant 0 : i32
    %c0_i32_0 = arith.constant 0 : i32
    %c0_i32_1 = arith.constant 0 : i32
    return %arg0, %c0_i32, %c0_i32_0 : i32, i32, i32
  }
}

</mosaic_0001>

<bundles_post_ra>
// kernel: tpu_custom_call.1
= control target key start
LH: loop header
LB: loop body
LE: loop exit
PB: predicated region body
PF: predicated region fallthrough
CT: control target
= control target key end

     0   :  { %s1505_s0 = inlined_call_operand.vmem [shape: s32[1,2], index: 0, kind: input, shape index: {}]   ;;  %s1506_s1 = inlined_call_operand.vmem [shape: f32[1,1,32], index: 1, kind: input, shape index: {}]   ;;  %s1507_s2 = inlined_call_operand.vmem [shape: f32[1,128,32], index: 2, kind: input, shape index: {}]   ;;  %s1508_s3 = inlined_call_operand.vmem [shape: f32[1,1,128], index: 3, kind: input, shape index: {}]   ;;  %s1509_s4 = inlined_call_operand.hbm [shape: f32[1,1,128], index: 4, kind: output, shape index: {}]  }
   0x1   :  { %s9_s17 = sshll.u32 %s1505_s0, 4  ;;  %s10_s17 = int_to_ptr.vmem [resolvable:$true] %s9_s17 }
   0x2   :  { %s760_s18 = scalar_lea.vmem %s10_s17, 16  ;;  %p765_p1 = scmp.lt.s32.totalorder %s10_s17, %s10_s17 }
   0x3   :  { %p761_p0 = scmp.ne.s32.totalorder %s10_s17, %s760_s18  ;;  %p766_p2 = scmp.lt.s32.totalorder %s760_s18, %s760_s18 }
   0x5   :  { %p767_p3 = por %p766_p2, %p765_p1 }
   0x7   :  { %p768_p4 = pnand %p767_p3, %p761_p0 }
   0x9   :  { %771 = shalt.err (!%p768_p4)  }
   0xa   :  { %s798_s19 = smov [#allocation3]  }
   0xb   :  { %12 = dma.vmem_to_smem %s10_s17, 16, %s798_s19, [#allocation2] }
   0xc   :  { %794 = dma.done.wait [#allocation2], 16 }
   0xd   :  { %795 = vsyncadd [#allocation2], 4294967280 }
   0xe   :  { %14 = sfence }
   0xf   :  { %v27_v0 = vld [vmem:[%s1507_s2] sm:$0xff]  ;;  %v28_v1 = vld [vmem:[%s1507_s2 + $0x8] sm:$0xff]  ;;  %vm44_vm0 = vcmask 261120   ;;  %v799_v2 = vmov 0.0|0.0   ;;  %vm800_vm2 = vmmov 0   ;;  %v801_v5 = vmov 0.0  }
  0x10   :  { %693 = vmatprep.subr.bf16.mxu0 %v799_v2  ;;  %v694_v3 = vpack.c.bf16 %v28_v1, %v27_v0  ;;  %vm842_vm1 = vmpackc.low %vm44_vm0, %vm44_vm0  ;;  %725 = vmatprep.subr.bf16.mxu1 %v799_v2  ;;  %v29_v6 = vld [vmem:[%s1507_s2 + $0x10] sm:$0xff]  ;;  %v30_v7 = vld [vmem:[%s1507_s2 + $0x18] sm:$0xff] }
  0x11   :  { %655 = vmatprep.mubr.msk.f32.mxu0 %vm800_vm2, %v801_v5  ;;  %690 = vmatprep.mubr.msk.f32.mxu1 %vm800_vm2, %v801_v5 }
  0x12   :  { %696 = vmatpush3.bf16.xpose.msk.msra.mxu0 %vm842_vm1, %v694_v3 }
  0x13   :  { %697 = vmatprep.subr.bf16.mxu0 %v799_v2 }
  0x14   :  { %15 = vsyncpa [#allocation5], 0  ;;  %v698_v8 = vpack.c.bf16 %v30_v7, %v29_v6  ;;  %v31_v9 = vld [vmem:[%s1507_s2 + $0x20] sm:$0xff]  ;;  %v32_v10 = vld [vmem:[%s1507_s2 + $0x28] sm:$0xff]  ;;  %s23_s26 = sld [smem:[#allocation3]]  ;;  %v166_v28 = vlaneseq  ;;  %s804_s29 = smov [#allocation4]  }
  0x15   :  { %v702_v11 = vpack.c.bf16 %v32_v10, %v31_v9  ;;  %v33_v12 = vld [vmem:[%s1507_s2 + $0x30] sm:$0xff]  ;;  %v34_v13 = vld [vmem:[%s1507_s2 + $0x38] sm:$0xff]  ;;  %v35_v15 = vld [vmem:[%s1507_s2 + $0x40] sm:$0xff]  ;;  %s563_s30 = sshll.u32 %s804_s29, 4  ;;  %s564_s30 = int_to_ptr.vmem [resolvable:$true] %s563_s30 }
  0x16   :  { %v706_v14 = vpack.c.bf16 %v34_v13, %v33_v12  ;;  %v36_v16 = vld [vmem:[%s1507_s2 + $0x48] sm:$0xff]  ;;  %v37_v18 = vld [vmem:[%s1507_s2 + $0x50] sm:$0xff]  ;;  %v38_v19 = vld [vmem:[%s1507_s2 + $0x58] sm:$0xff]  ;;  %v918_v29 = vshrl.u32 %v166_v28, 7  ;;  %v920_v30 = vand.u32 127, %v166_v28  ;;  %s776_s5 = scalar_lea.vmem %s564_s30, 32  ;;  %p777_p6 = scmp.lt.s32.totalorder %s564_s30, %s564_s30 }
  0x17   :  { %v710_v17 = vpack.c.bf16 %v36_v16, %v35_v15  ;;  %v714_v20 = vpack.c.bf16 %v38_v19, %v37_v18  ;;  %v39_v21 = vld [vmem:[%s1507_s2 + $0x60] sm:$0xff]  ;;  %v40_v22 = vld [vmem:[%s1507_s2 + $0x68] sm:$0xff]  ;;  %v41_v24 = vld [vmem:[%s1507_s2 + $0x70] sm:$0xff] }
  0x18   :  { %v718_v23 = vpack.c.bf16 %v40_v22, %v39_v21  ;;  %v42_v25 = vld [vmem:[%s1507_s2 + $0x78] sm:$0xff]  ;;  %v26_v27 = vld [vmem:[%s1506_s1] sm:$0x1]  ;;  %v925_v32 = vadd.s32 16, %v918_v29  ;;  %v223_v33 = vsub.s32 0, %v918_v29  ;;  %vm189_vm5 = vcmp.eq.s32.totalorder %v918_v29, %v920_v30  ;;  %s571_s1 = sld [smem:[#allocation3 + $0x1]] }
  0x19   :  { %v722_v26 = vpack.c.bf16 %v42_v25, %v41_v24  ;;  %v935_v34 = vadd.s32 24, %v918_v29  ;;  %v938_v35 = vadd.s32 8, %v918_v29  ;;  %v205_v40 = vsel %vm189_vm5, 1.0, %v801_v5 }
  0x1a   :  { %700 = vmatpush3.bf16.xpose.msk.msra.mxu0 %vm842_vm1, %v698_v8  ;;  %v922_v31 = vstv %s23_s26  ;;  %vm191_vm4 = vcmp.eq.s32.totalorder %v925_v32, %v920_v30  ;;  %v954_v41 = vadd.s32 40, %v918_v29  ;;  %v964_v43 = vadd.s32 32, %v918_v29 }
  0x1b   :  { %701 = vmatprep.subr.bf16.mxu0 %v799_v2  ;;  %vm1510_vm3 = vcmp.lt.s32.totalorder %v920_v30, %v922_v31  ;;  %v207_v39 = vsel %vm191_vm4, 1.0, %v801_v5  ;;  %vm192_vm6 = vcmp.eq.s32.totalorder %v935_v34, %v920_v30  ;;  %vm190_vm7 = vcmp.eq.s32.totalorder %v938_v35, %v920_v30 }
  0x1c   :  { %v208_v46 = vsel %vm192_vm6, 1.0, %v801_v5  ;;  %v206_v47 = vsel %vm190_vm7, 1.0, %v801_v5  ;;  %vm194_vm8 = vcmp.eq.s32.totalorder %v954_v41, %v920_v30  ;;  %vm1521_vm9 = vcmp.eq.s32.totalorder %v964_v43, %v920_v30 }
  0x1d   :  { %v981_v48 = vadd.s32 56, %v918_v29  ;;  %v984_v49 = vadd.s32 48, %v918_v29  ;;  %v210_v52 = vsel %vm194_vm8, 1.0, %v801_v5  ;;  %v209_v53 = vsel %vm1521_vm9, 1.0, %v801_v5 }
  0x1e   :  { %v1001_v54 = vadd.s32 72, %v918_v29  ;;  %v1004_v55 = vadd.s32 64, %v918_v29  ;;  %v1021_v60 = vadd.s32 88, %v918_v29  ;;  %v1024_v61 = vadd.s32 80, %v918_v29  ;;  %s535_s2 = scvt.s32.f32 %s571_s1 }
  0x1f   :  { %vm1520_vm10 = vcmp.eq.s32.totalorder %v981_v48, %v920_v30  ;;  %vm1519_vm11 = vcmp.eq.s32.totalorder %v984_v49, %v920_v30  ;;  %v1041_v3 = vadd.s32 104, %v918_v29  ;;  %v1044_v4 = vadd.s32 96, %v918_v29 }
  0x20   :  { %v212_v58 = vsel %vm1520_vm10, 1.0, %v801_v5  ;;  %v211_v59 = vsel %vm1519_vm11, 1.0, %v801_v5  ;;  %vm1518_vm12 = vcmp.eq.s32.totalorder %v1001_v54, %v920_v30  ;;  %vm1517_vm13 = vcmp.eq.s32.totalorder %v1004_v55, %v920_v30 }
  0x21   :  { %v214_v0 = vsel %vm1518_vm12, 1.0, %v801_v5  ;;  %v213_v1 = vsel %vm1517_vm13, 1.0, %v801_v5  ;;  %vm1516_vm14 = vcmp.eq.s32.totalorder %v1021_v60, %v920_v30  ;;  %vm1515_vm15 = vcmp.eq.s32.totalorder %v1024_v61, %v920_v30 }
  0x22   :  { %704 = vmatpush3.bf16.xpose.msk.msra.mxu0 %vm842_vm1, %v702_v11  ;;  %v216_v8 = vsel %vm1516_vm14, 1.0, %v801_v5  ;;  %v215_v9 = vsel %vm1515_vm15, 1.0, %v801_v5  ;;  %v1061_v10 = vadd.s32 120, %v918_v29  ;;  %v1064_v11 = vadd.s32 112, %v918_v29 }
  0x23   :  { %705 = vmatprep.subr.bf16.mxu0 %v799_v2  ;;  %vm275_vm13 = vcmp.lt.s32.totalorder %v925_v32, %v922_v31  ;;  %v1532_v25 = vmov 0 }
  0x24   :  { %vm1513_vm2 = vcmp.eq.s32.totalorder %v1061_v10, %v920_v30 }
  0x25   :  { %v220_v18 = vsel %vm1513_vm2, 1.0, %v801_v5  ;;  %vm355_vm2 = vcmp.lt.s32.totalorder %v925_v32, %v920_v30 }
  0x2a   :  { %708 = vmatpush3.bf16.xpose.msk.msra.mxu0 %vm842_vm1, %v706_v14 }
  0x2b   :  { %709 = vmatprep.subr.bf16.mxu0 %v799_v2 }
  0x32   :  { %712 = vmatpush3.bf16.xpose.msk.msra.mxu0 %vm842_vm1, %v710_v17 }
  0x33   :  { %713 = vmatprep.subr.bf16.mxu0 %v799_v2 }
  0x3a   :  { %716 = vmatpush3.bf16.xpose.msk.msra.mxu0 %vm842_vm1, %v714_v20 }
  0x3b   :  { %717 = vmatprep.subr.bf16.mxu0 %v799_v2 }
  0x42   :  { %720 = vmatpush3.bf16.xpose.msk.msra.mxu0 %vm842_vm1, %v718_v23 }
  0x43   :  { %721 = vmatprep.subr.bf16.mxu0 %v799_v2 }
  0x4a   :  { %724 = vmatpush3.bf16.xpose.msk.msra.mxu0 %vm842_vm1, %v722_v26  ;;  %vm1511_vm1 = vcmp.eq.s32.totalorder %v1044_v4, %v920_v30 }
  0x4b   :  { %v217_v15 = vsel %vm1511_vm1, 1.0, %v801_v5  ;;  %vm1522_vm1 = vmmov 1  }
  0x51   :  { %656 = vmatmul.mubr.msk.f32.vlgmr.msra.gmra.mrb[0].mxu0 %vm44_vm0, %v26_v27  ;;  %vm1512_vm0 = vcmp.eq.s32.totalorder %v1041_v3, %v920_v30 }
  0x52   :  { %v218_v14 = vsel %vm1512_vm0, 1.0, %v801_v5  ;;  %vm307_vm0 = vmxor %vm191_vm4, %vm1522_vm1 }
 0x124   :  { %v162_v36 = vpop.f32.mrb[0].mxu0 }
 0x125   :  { %v943_v37 = vsel %vm1510_vm3, %v162_v36, 0.0  ;;  %v657_v38 = vpop.f32.mrb[1].mxu0  ;;  %vm1514_vm3 = vcmp.eq.s32.totalorder %v1064_v11, %v920_v30  ;;  %v1541_v36 = vmov 0 }
 0x126   :  { %v957_v42 = vrot.slane %v943_v37, %v223_v33  ;;  %v219_v19 = vsel %vm1514_vm3, 1.0, %v801_v5  ;;  %vm1102_vm3 = vmxor %vm189_vm5, %vm1522_vm1  ;;  %v1538_v33 = vmov 0 }
 0x127   :  { %vm1118_vm5 = vmxor %vm192_vm6, %vm1522_vm1 }
 0x128   :  { %v227_v44 = vmul.f32 %v957_v42, %v207_v39  ;;  %v225_v45 = vmul.f32 %v957_v42, %v205_v40  ;;  %v228_v50 = vmul.f32 %v957_v42, %v208_v46  ;;  %v226_v51 = vmul.f32 %v957_v42, %v206_v47  ;;  %vm1138_vm6 = vmxor %vm194_vm8, %vm1522_vm1 }
 0x129   :  { %v230_v56 = vmul.f32 %v957_v42, %v210_v52  ;;  %v229_v57 = vmul.f32 %v957_v42, %v209_v53  ;;  %v232_v62 = vmul.f32 %v957_v42, %v212_v58  ;;  %v231_v63 = vmul.f32 %v957_v42, %v211_v59 }
 0x12a   :  { %245 = vadd.xlane.f32.xlu1 %v227_v44  ;;  %241 = vadd.xlane.f32.xlu0 %v225_v45  ;;  %v234_v6 = vmul.f32 %v957_v42, %v214_v0  ;;  %v233_v7 = vmul.f32 %v957_v42, %v213_v1  ;;  %v236_v12 = vmul.f32 %v957_v42, %v216_v8  ;;  %v1539_v33 = vsel %vm1138_vm6, 4294967295, %v1538_v33 }
 0x12b   :  { %v235_v13 = vmul.f32 %v957_v42, %v215_v9  ;;  %v238_v16 = vmul.f32 %v957_v42, %v218_v14  ;;  %v237_v17 = vmul.f32 %v957_v42, %v217_v15  ;;  %v240_v20 = vmul.f32 %v957_v42, %v220_v18 }
 0x12c   :  { %v239_v21 = vmul.f32 %v957_v42, %v219_v19  ;;  %vm356_vm8 = vcmp.lt.s32.totalorder %v935_v34, %v920_v30  ;;  %v1545_v39 = vmov 0  ;;  %v1551_v46 = vmov 0 }
 0x12d   :  { %vm276_vm6 = vcmp.lt.s32.totalorder %v935_v34, %v922_v31  ;;  %v1566_v34 = vmov 0  ;;  %v1571_v58 = vmov 0  ;;  %v1581_v0 = vmov 0 }
 0x12e   :  { %247 = vadd.xlane.f32.xlu1 %v228_v50  ;;  %243 = vadd.xlane.f32.xlu0 %v226_v51  ;;  %v1553_v50 = vmov 0  ;;  %v1557_v51 = vmov 0  ;;  %v1606_v15 = vmov 0 }
 0x132   :  { %251 = vadd.xlane.f32.xlu1 %v230_v56  ;;  %249 = vadd.xlane.f32.xlu0 %v229_v57  ;;  %v43_v56 = vld [vmem:[%s1508_s3] sm:$0x1]  ;;  %s772_s3 = scalar_lea.vmem %s564_s30, 16 }
 0x133   :  { %p773_p5 = scmp.ne.s32.totalorder %s564_s30, %s772_s3  ;;  %p778_p7 = scmp.lt.s32.totalorder %s776_s5, %s772_s3 }
 0x135   :  { %p779_p8 = por %p778_p7, %p777_p6 }
 0x136   :  { %255 = vadd.xlane.f32.xlu1 %v232_v62  ;;  %253 = vadd.xlane.f32.xlu0 %v231_v63 }
 0x137   :  { %p780_p9 = pnand %p779_p8, %p773_p5 }
 0x13a   :  { %259 = vadd.xlane.f32.xlu1 %v234_v6  ;;  %257 = vadd.xlane.f32.xlu0 %v233_v7 }
 0x13e   :  { %263 = vadd.xlane.f32.xlu1 %v236_v12  ;;  %261 = vadd.xlane.f32.xlu0 %v235_v13 }
 0x142   :  { %267 = vadd.xlane.f32.xlu1 %v238_v16  ;;  %265 = vadd.xlane.f32.xlu0 %v237_v17 }
 0x146   :  { %271 = vadd.xlane.f32.xlu1 %v240_v20  ;;  %269 = vadd.xlane.f32.xlu0 %v239_v21  ;;  %v1614_v20 = vmov 0 }
 0x1b7   :  { %v246_v22 = vpop.xlane.xlu1 %245  ;;  %v242_v24 = vpop.xlane.xlu0 %241 }
 0x1b8   :  { %vm291_vm15 = vcmp.gt.f32.partialorder %v246_v22, %v957_v42  ;;  %vm339_vm14 = vcmp.eq.f32.partialorder %v246_v22, %v957_v42  ;;  %vm289_vm9 = vcmp.gt.f32.partialorder %v242_v24, %v957_v42 }
 0x1b9   :  { %vm323_vm4 = vmand %vm291_vm15, %vm307_vm0 }
 0x1ba   :  { %vm371_vm12 = vmand %vm339_vm14, %vm355_vm2 }
 0x1bb   :  { %vm387_vm11 = vmor %vm323_vm4, %vm371_vm12  ;;  %v248_v27 = vpop.xlane.xlu1 %247  ;;  %v244_v32 = vpop.xlane.xlu0 %243 }
 0x1bc   :  { %vm1110_vm10 = vmand %vm387_vm11, %vm275_vm13  ;;  %vm353_vm11 = vcmp.lt.s32.totalorder %v918_v29, %v920_v30  ;;  %vm337_vm13 = vcmp.eq.f32.partialorder %v242_v24, %v957_v42  ;;  %vm292_vm14 = vcmp.gt.f32.partialorder %v248_v27, %v957_v42  ;;  %vm340_vm2 = vcmp.eq.f32.partialorder %v248_v27, %v957_v42 }
 0x1bd   :  { %v1533_v25 = vsel %vm1110_vm10, 4294967295, %v1532_v25  ;;  %vm1127_vm12 = vmxor %vm190_vm7, %vm1522_vm1  ;;  %vm1540_vm7 = vcmp.eq.s32.totalorder %v964_v43, %v920_v30 }
 0x1be   :  { %vm1147_vm15 = vmxor %vm1540_vm7, %vm1522_vm1  ;;  %vm290_vm7 = vcmp.gt.f32.partialorder %v244_v32, %v957_v42 }
 0x1bf   :  { %v1542_v36 = vsel %vm1147_vm15, 4294967295, %v1541_v36  ;;  %vm1153_vm0 = vmand %vm289_vm9, %vm1102_vm3  ;;  %vm354_vm3 = vcmp.lt.s32.totalorder %v938_v35, %v920_v30  ;;  %vm338_vm9 = vcmp.eq.f32.partialorder %v244_v32, %v957_v42  ;;  %v252_v44 = vpop.xlane.xlu1 %251  ;;  %v250_v47 = vpop.xlane.xlu0 %249  ;;  %vm1556_vm15 = vcmp.eq.s32.totalorder %v981_v48, %v920_v30 }
 0x1c0   :  { %vm1160_vm4 = vmand %vm337_vm13, %vm353_vm11  ;;  %vm294_vm13 = vcmp.gt.f32.partialorder %v252_v44, %v957_v42 }
 0x1c1   :  { %v1546_v39 = vsel %vm1160_vm4, 4294967295, %v1545_v39  ;;  %vm1167_vm1 = vmand %vm292_vm14, %vm1118_vm5  ;;  %vm358_vm14 = vcmp.lt.s32.totalorder %v954_v41, %v920_v30  ;;  %vm1564_vm4 = vmmov 1  }
 0x1c2   :  { %vm1174_vm10 = vmand %vm340_vm2, %vm356_vm8  ;;  %vm342_vm8 = vcmp.eq.f32.partialorder %v252_v44, %v957_v42  ;;  %vm1555_vm2 = vmmov 1  }
 0x1c3   :  { %vm1180_vm11 = vmand %vm290_vm7, %vm1127_vm12  ;;  %vm357_vm7 = vcmp.lt.s32.totalorder %v964_v43, %v920_v30  ;;  %v256_v53 = vpop.xlane.xlu1 %255  ;;  %v254_v63 = vpop.xlane.xlu0 %253 }
 0x1c4   :  { %v1552_v46 = vsel %vm1180_vm11, 4294967295, %v1551_v46  ;;  %vm1184_vm5 = vmand %vm338_vm9, %vm354_vm3  ;;  %vm293_vm9 = vcmp.gt.f32.partialorder %v250_v47, %v957_v42 }
 0x1c5   :  { %v1554_v50 = vsel %vm1184_vm5, 4294967295, %v1553_v50  ;;  %vm1196_vm12 = vmxor %vm1556_vm15, %vm1555_vm2  ;;  %vm1565_vm15 = vcmp.eq.s32.totalorder %v984_v49, %v920_v30 }
 0x1c6   :  { %v1558_v51 = vsel %vm1196_vm12, 4294967295, %v1557_v51  ;;  %vm388_vm3 = vmor %vm1167_vm1, %vm1174_vm10  ;;  %vm1559_vm12 = vnez %v1539_v33  ;;  %vm341_vm10 = vcmp.eq.f32.partialorder %v250_v47, %v957_v42  ;;  %v536_v47 = vstv %s535_s2 }
 0x1c7   :  { %vm1217_vm2 = vmand %vm294_vm13, %vm1559_vm12  ;;  %vm1568_vm13 = vnez %v1542_v36  ;;  %v258_v9 = vpop.xlane.xlu0 %257 }
 0x1c8   :  { %vm1224_vm1 = vmand %vm342_vm8, %vm358_vm14  ;;  %vm296_vm8 = vcmp.gt.f32.partialorder %v256_v53, %v957_v42 }
 0x1c9   :  { %vm1232_vm5 = vmxor %vm1565_vm15, %vm1564_vm4  ;;  %vm278_vm15 = vcmp.lt.s32.totalorder %v954_v41, %v922_v31  ;;  %v1576_v41 = vmov 0 }
 0x1ca   :  { %v1567_v34 = vsel %vm1232_vm5, 4294967295, %v1566_v34  ;;  %vm1238_vm12 = vmand %vm293_vm9, %vm1568_vm13 }
 0x1cb   :  { %vm1242_vm11 = vmand %vm388_vm3, %vm276_vm6  ;;  %vm360_vm6 = vcmp.lt.s32.totalorder %v981_v48, %v920_v30  ;;  %vm344_vm3 = vcmp.eq.f32.partialorder %v256_v53, %v957_v42 }
 0x1cc   :  { %v1572_v58 = vsel %vm1242_vm11, 4294967295, %v1571_v58  ;;  %vm1246_vm14 = vmand %vm341_vm10, %vm357_vm7  ;;  %vm1575_vm10 = vcmp.eq.s32.totalorder %v1001_v54, %v920_v30 }
 0x1cd   :  { %vm390_vm9 = vmor %vm1217_vm2, %vm1224_vm1  ;;  %vm277_vm2 = vcmp.lt.s32.totalorder %v964_v43, %v922_v31  ;;  %vm1578_vm1 = vnez %v1558_v51  ;;  %v1583_v43 = vmov 0 }
 0x1ce   :  { %vm389_vm7 = vmor %vm1238_vm12, %vm1246_vm14  ;;  %vm273_vm14 = vcmp.lt.s32.totalorder %v918_v29, %v922_v31  ;;  %v1586_v29 = vmov 0 }
 0x1cf   :  { %vm1268_vm13 = vmxor %vm1575_vm10, %vm1564_vm4  ;;  %vm280_vm10 = vcmp.lt.s32.totalorder %v981_v48, %v922_v31  ;;  %v1590_v48 = vmov 0 }
 0x1d0   :  { %v1577_v41 = vsel %vm1268_vm13, 4294967295, %v1576_v41  ;;  %vm1276_vm11 = vmand %vm296_vm8, %vm1578_vm1  ;;  %vm274_vm8 = vcmp.lt.s32.totalorder %v938_v35, %v922_v31  ;;  %v260_v35 = vpop.xlane.xlu1 %259 }
 0x1d1   :  { %vm1280_vm5 = vmand %vm390_vm9, %vm278_vm15  ;;  %vm295_vm15 = vcmp.gt.f32.partialorder %v254_v63, %v957_v42  ;;  %vm1585_vm9 = vcmp.eq.s32.totalorder %v1004_v55, %v920_v30 }
 0x1d2   :  { %v1582_v0 = vsel %vm1280_vm5, 4294967295, %v1581_v0  ;;  %vm376_vm12 = vmand %vm344_vm3, %vm360_vm6 }
 0x1d3   :  { %vm392_vm13 = vmor %vm1276_vm11, %vm376_vm12  ;;  %vm1588_vm11 = vnez %v1546_v39 }
 0x1d4   :  { %vm1292_vm1 = vmand %vm389_vm7, %vm277_vm2  ;;  %vm359_vm7 = vcmp.lt.s32.totalorder %v984_v49, %v920_v30  ;;  %vm343_vm2 = vcmp.eq.f32.partialorder %v254_v63, %v957_v42 }
 0x1d5   :  { %v1584_v43 = vsel %vm1292_vm1, 4294967295, %v1583_v43  ;;  %vm1301_vm6 = vmxor %vm1585_vm9, %vm1564_vm4  ;;  %vm1592_vm9 = vnez %v1552_v46 }
 0x1d6   :  { %v1587_v29 = vsel %vm1301_vm6, 4294967295, %v1586_v29  ;;  %vm1589_vm3 = vmor %vm1153_vm0, %vm1588_vm11  ;;  %vm1593_vm6 = vnez %v1554_v50  ;;  %vm279_vm0 = vcmp.lt.s32.totalorder %v984_v49, %v922_v31 }
 0x1d7   :  { %vm433_vm12 = vmand %vm1589_vm3, %vm273_vm14  ;;  %vm1595_vm14 = vnez %v1567_v34  ;;  %vm1596_vm3 = vmmov 1  }
 0x1d8   :  { %vm1313_vm5 = vmand %vm392_vm13, %vm280_vm10  ;;  %v449_v1 = vsel %vm433_vm12, 1.0, %v801_v5  ;;  %vm298_vm10 = vcmp.gt.f32.partialorder %v260_v35, %v957_v42 }
 0x1d9   :  { %v1591_v48 = vsel %vm1313_vm5, 4294967295, %v1590_v48  ;;  %vm1594_vm1 = vmor %vm1592_vm9, %vm1593_vm6  ;;  %vm1597_vm5 = vcmp.eq.s32.totalorder %v1021_v60, %v920_v30  ;;  %vm1604_vm9 = vnez %v1533_v25 }
 0x1da   :  { %vm434_vm4 = vmand %vm1594_vm1, %vm274_vm8  ;;  %vm346_vm1 = vcmp.eq.f32.partialorder %v260_v35, %v957_v42  ;;  %v451_v13 = vsel %vm1604_vm9, 1.0, %v801_v5  ;;  %vm1612_vm9 = vnez %v1587_v29 }
 0x1db   :  { %v450_v6 = vsel %vm434_vm4, 1.0, %v801_v5  ;;  %vm327_vm11 = vmand %vm295_vm15, %vm1595_vm14  ;;  %vm362_vm4 = vcmp.lt.s32.totalorder %v1001_v54, %v920_v30  ;;  %vm1600_vm15 = vnez %v1572_v58 }
 0x1dc   :  { %v726_v7 = vpack.c.bf16 %v450_v6, %v449_v1  ;;  %vm375_vm13 = vmand %vm343_vm2, %vm359_vm7  ;;  %v452_v49 = vsel %vm1600_vm15, 1.0, %v801_v5  ;;  %vm1603_vm7 = vnez %v1577_v41  ;;  %vm345_vm15 = vcmp.eq.f32.partialorder %v258_v9, %v957_v42 }
 0x1dd   :  { %vm1333_vm6 = vmxor %vm1597_vm5, %vm1596_vm3  ;;  %vm282_vm5 = vcmp.lt.s32.totalorder %v1001_v54, %v922_v31  ;;  %v729_v14 = vpack.c.bf16 %v452_v49, %v451_v13  ;;  %v264_v54 = vpop.xlane.xlu1 %263 }
 0x1de   :  { %vm391_vm8 = vmor %vm327_vm11, %vm375_vm13  ;;  %727 = vmatpush3.bf16.msra.mxu1 %v726_v7  ;;  %vm297_vm11 = vcmp.gt.f32.partialorder %v258_v9, %v957_v42 }
 0x1df   :  { %vm1343_vm12 = vmand %vm391_vm8, %vm279_vm0  ;;  %728 = vmatprep.subr.bf16.mxu1 %v799_v2  ;;  %vm1605_vm0 = vcmp.eq.s32.totalorder %v1024_v61, %v920_v30 }
 0x1e0   :  { %vm330_vm2 = vmand %vm298_vm10, %vm1603_vm7  ;;  %vm361_vm10 = vcmp.lt.s32.totalorder %v1004_v55, %v920_v30  ;;  %v455_v21 = vsel %vm1343_vm12, 1.0, %v801_v5  ;;  %vm1617_vm12 = vcmp.eq.s32.totalorder %v1044_v4, %v920_v30 }
 0x1e1   :  { %vm378_vm14 = vmand %vm346_vm1, %vm362_vm4  ;;  %vm1608_vm4 = vnez %v1584_v43  ;;  %vm1609_vm1 = vnez %v1582_v0 }
 0x1e2   :  { %vm1360_vm13 = vmxor %vm1605_vm0, %vm1596_vm3  ;;  %v453_v16 = vsel %vm1608_vm4, 1.0, %v801_v5  ;;  %v454_v17 = vsel %vm1609_vm1, 1.0, %v801_v5  ;;  %730 = vmatpush3.bf16.msra.mxu1 %v729_v14  ;;  %vm300_vm4 = vcmp.gt.f32.partialorder %v264_v54, %v957_v42 }
 0x1e3   :  { %v1607_v15 = vsel %vm1360_vm13, 4294967295, %v1606_v15  ;;  %vm394_vm8 = vmor %vm330_vm2, %vm378_vm14  ;;  %vm281_vm2 = vcmp.lt.s32.totalorder %v1004_v55, %v922_v31  ;;  %731 = vmatprep.subr.bf16.mxu1 %v799_v2  ;;  %v732_v19 = vpack.c.bf16 %v454_v17, %v453_v16  ;;  %vm364_vm13 = vcmp.lt.s32.totalorder %v1021_v60, %v920_v30  ;;  %v262_v55 = vpop.xlane.xlu0 %261 }
 0x1e4   :  { %vm1373_vm7 = vmand %vm394_vm8, %vm282_vm5  ;;  %vm1613_vm5 = vcmp.eq.s32.totalorder %v1041_v3, %v920_v30 }
 0x1e5   :  { %vm329_vm14 = vmand %vm297_vm11, %vm1612_vm9  ;;  %vm348_vm11 = vcmp.eq.f32.partialorder %v264_v54, %v957_v42  ;;  %vm284_vm9 = vcmp.lt.s32.totalorder %v1021_v60, %v922_v31  ;;  %v268_v60 = vpop.xlane.xlu1 %267  ;;  %v458_v26 = vsel %vm1373_vm7, 1.0, %v801_v5 }
 0x1e6   :  { %vm377_vm0 = vmand %vm345_vm15, %vm361_vm10  ;;  %vm1616_vm10 = vnez %v1591_v48  ;;  %733 = vmatpush3.bf16.msra.mxu1 %v732_v19 }
 0x1e7   :  { %vm1387_vm8 = vmxor %vm1613_vm5, %vm1596_vm3  ;;  %v456_v22 = vsel %vm1616_vm10, 1.0, %v801_v5  ;;  %734 = vmatprep.subr.bf16.mxu1 %v799_v2  ;;  %vm299_vm5 = vcmp.gt.f32.partialorder %v262_v55, %v957_v42 }
 0x1e8   :  { %v1615_v20 = vsel %vm1387_vm8, 4294967295, %v1614_v20  ;;  %vm393_vm1 = vmor %vm329_vm14, %vm377_vm0  ;;  %v735_v23 = vpack.c.bf16 %v456_v22, %v455_v21 }
 0x1e9   :  { %vm441_vm15 = vmand %vm393_vm1, %vm281_vm2  ;;  %vm363_vm1 = vcmp.lt.s32.totalorder %v1024_v61, %v920_v30 }
 0x1ea   :  { %vm332_vm14 = vmand %vm300_vm4, %vm1333_vm6  ;;  %vm347_vm6 = vcmp.eq.f32.partialorder %v262_v55, %v957_v42  ;;  %v457_v25 = vsel %vm441_vm15, 1.0, %v801_v5  ;;  %736 = vmatpush3.bf16.msra.mxu1 %v735_v23  ;;  %vm283_vm4 = vcmp.lt.s32.totalorder %v1024_v61, %v922_v31  ;;  %vm1621_vm15 = vcmp.eq.s32.totalorder %v1061_v10, %v920_v30  ;;  %v266_v61 = vpop.xlane.xlu0 %265 }
 0x1eb   :  { %vm380_vm0 = vmand %vm348_vm11, %vm364_vm13  ;;  %vm1620_vm11 = vnez %v1607_v15  ;;  %737 = vmatprep.subr.bf16.mxu1 %v799_v2  ;;  %v738_v28 = vpack.c.bf16 %v458_v26, %v457_v25 }
 0x1ec   :  { %vm1410_vm8 = vmxor %vm1617_vm12, %vm1596_vm3 }
 0x1ed   :  { %vm396_vm2 = vmor %vm332_vm14, %vm380_vm0  ;;  %vm302_vm0 = vcmp.gt.f32.partialorder %v268_v60, %v957_v42 }
 0x1ee   :  { %vm444_vm13 = vmand %vm396_vm2, %vm284_vm9  ;;  %vm366_vm9 = vcmp.lt.s32.totalorder %v1041_v3, %v920_v30  ;;  %739 = vmatpush3.bf16.msra.mxu1 %v738_v28  ;;  %v270_v39 = vpop.xlane.xlu0 %269 }
 0x1ef   :  { %vm331_vm10 = vmand %vm299_vm5, %vm1620_vm11  ;;  %vm350_vm5 = vcmp.eq.f32.partialorder %v268_v60, %v957_v42  ;;  %v460_v32 = vsel %vm444_vm13, 1.0, %v801_v5  ;;  %740 = vmatprep.subr.bf16.mxu1 %v799_v2 }
 0x1f0   :  { %vm379_vm14 = vmand %vm347_vm6, %vm363_vm1  ;;  %vm286_vm1 = vcmp.lt.s32.totalorder %v1041_v3, %v922_v31  ;;  %vm1624_vm6 = vnez %v1615_v20  ;;  %v272_v3 = vpop.xlane.xlu1 %271 }
 0x1f1   :  { %vm1431_vm12 = vmxor %vm1621_vm15, %vm1596_vm3  ;;  %vm1625_vm15 = vcmp.eq.s32.totalorder %v1064_v11, %v920_v30 }
 0x1f2   :  { %vm395_vm7 = vmor %vm331_vm10, %vm379_vm14  ;;  %vm301_vm14 = vcmp.gt.f32.partialorder %v266_v61, %v957_v42 }
 0x1f3   :  { %vm443_vm2 = vmand %vm395_vm7, %vm283_vm4  ;;  %vm349_vm7 = vcmp.eq.f32.partialorder %v266_v61, %v957_v42 }
 0x1f4   :  { %vm334_vm11 = vmand %vm302_vm0, %vm1624_vm6  ;;  %v459_v33 = vsel %vm443_vm2, 1.0, %v801_v5  ;;  %vm365_vm0 = vcmp.lt.s32.totalorder %v1044_v4, %v920_v30  ;;  %vm304_vm6 = vcmp.gt.f32.partialorder %v272_v3, %v957_v42 }
 0x1f5   :  { %vm382_vm10 = vmand %vm350_vm5, %vm366_vm9  ;;  %v741_v38 = vpack.c.bf16 %v460_v32, %v459_v33  ;;  %vm285_vm9 = vcmp.lt.s32.totalorder %v1044_v4, %v922_v31 }
 0x1f6   :  { %vm1450_vm13 = vmxor %vm1625_vm15, %vm1596_vm3  ;;  %vm352_vm15 = vcmp.eq.f32.partialorder %v272_v3, %v957_v42 }
 0x1f7   :  { %vm398_vm4 = vmor %vm334_vm11, %vm382_vm10  ;;  %742 = vmatpush3.bf16.msra.mxu1 %v741_v38  ;;  %vm368_vm10 = vcmp.lt.s32.totalorder %v1061_v10, %v920_v30 }
 0x1f8   :  { %vm446_vm2 = vmand %vm398_vm4, %vm286_vm1  ;;  %743 = vmatprep.subr.bf16.mxu1 %v799_v2  ;;  %vm288_vm4 = vcmp.lt.s32.totalorder %v1061_v10, %v922_v31 }
 0x1f9   :  { %vm333_vm5 = vmand %vm301_vm14, %vm1410_vm8  ;;  %v462_v40 = vsel %vm446_vm2, 1.0, %v801_v5 }
 0x1fa   :  { %vm381_vm3 = vmand %vm349_vm7, %vm365_vm0  ;;  %vm303_vm0 = vcmp.gt.f32.partialorder %v270_v39, %v957_v42 }
 0x1fb   :  { %vm397_vm11 = vmor %vm333_vm5, %vm381_vm3  ;;  %vm367_vm5 = vcmp.lt.s32.totalorder %v1064_v11, %v920_v30  ;;  %vm351_vm3 = vcmp.eq.f32.partialorder %v270_v39, %v957_v42  ;;  %v803_v42 = vmov 1.0  }
 0x1fc   :  { %vm445_vm1 = vmand %vm397_vm11, %vm285_vm9  ;;  %vm287_vm9 = vcmp.lt.s32.totalorder %v1064_v11, %v922_v31 }
 0x1fd   :  { %vm336_vm8 = vmand %vm304_vm6, %vm1431_vm12  ;;  %v461_v4 = vsel %vm445_vm1, 1.0, %v801_v5  ;;  %vm1628_vm1 = vcmp.lt.s32.totalorder %v920_v30, %v922_v31 }
 0x1fe   :  { %vm384_vm14 = vmand %vm352_vm15, %vm368_vm10  ;;  %v744_v44 = vpack.c.bf16 %v462_v40, %v461_v4 }
 0x1ff   :  { %vm400_vm7 = vmor %vm336_vm8, %vm384_vm14 }
 0x200   :  { %vm448_vm2 = vmand %vm400_vm7, %vm288_vm4  ;;  %745 = vmatpush3.bf16.msra.mxu1 %v744_v44 }
 0x201   :  { %vm335_vm12 = vmand %vm303_vm0, %vm1450_vm13  ;;  %746 = vmatprep.subr.bf16.mxu1 %v799_v2  ;;  %v464_v10 = vsel %vm448_vm2, 1.0, %v801_v5  ;;  %vm540_vm13 = vcmask 1040384  }
 0x202   :  { %vm383_vm6 = vmand %vm351_vm3, %vm367_vm5 }
 0x203   :  { %vm399_vm11 = vmor %vm335_vm12, %vm383_vm6 }
 0x204   :  { %vm447_vm10 = vmand %vm399_vm11, %vm287_vm9 }
 0x205   :  { %v463_v45 = vsel %vm447_vm10, 1.0, %v801_v5  ;;  %vm1629_vm8 = vmmov %vm1628_vm1 }
 0x206   :  { %v747_v46 = vpack.c.bf16 %v464_v10, %v463_v45  ;;  %v171_v34 = vsel %vm1629_vm8, %v43_v56, 0.0 }
 0x208   :  { %748 = vmatpush3.bf16.msra.mxu1 %v747_v46 }
 0x20b   :  { %691 = vmatmul.mubr.f32.vlgmr.msra.gmra.mrb[0].mxu1 %v803_v42 }
 0x2de   :  { %v531_v11 = vpop.f32.mrb[0].mxu1 }
 0x2df   :  { %vm537_vm15 = vcmp.lt.f32.partialorder %v531_v11, %v536_v47  ;;  %v692_v50 = vpop.f32.mrb[1].mxu1 }
 0x2e0   :  { %vm538_vm4 = vmand %vm537_vm15, %vm1628_vm1 }
 0x2e1   :  { %v539_v2 = vsel %vm538_vm4, %v943_v37, -1e+30 }
 0x2e2   :  { %v541_v51 = vsel %vm540_vm13, %v539_v2, -inf }
 0x2e3   :  { %542 = vmax.xlane.f32.xlu0 %v541_v51 }
 0x370   :  { %v543_v5 = vpop.xlane.xlu0 %542 }
 0x371   :  { %v544_v52 = vsub.f32 %v539_v2, %v543_v5 }
 0x373   :  { %v545_v53 = vmul.f32 1.442695, %v544_v52 }
 0x375   :  { %756 = vpow2.f32 %v545_v53 }
 0x37f   :  { %v757_v57 = vpop.eup %756 }
 0x380   :  { %v551_v58 = vsel %vm540_vm13, %v757_v57, 0.0  ;;  %v547_v59 = vmul.f32 %v757_v57, %v171_v34 }
 0x381   :  { %552 = vadd.xlane.f32.xlu1 %v551_v58 }
 0x382   :  { %v548_v41 = vsel %vm540_vm13, %v547_v59, 0.0 }
 0x383   :  { %549 = vadd.xlane.f32.xlu0 %v548_v41 }
 0x40e   :  { %v553_v37 = vpop.xlane.xlu1 %552 }
 0x40f   :  { %758 = vrcp.f32 %v553_v37 }
 0x410   :  { %v550_v63 = vpop.xlane.xlu0 %549 }
 0x419   :  { %v759_v62 = vpop.eup %758 }
 0x41a   :  { %v555_v0 = vmul.f32 %v759_v62, %v550_v63 }
 0x41c   :  { %556 = vst [vmem:[#allocation4] sm:$0x1] %v555_v0 }
 0x41d   :  { %783 = shalt.err (!%p780_p9)
}
 0x41e   :  { %s784_s8 = scalar_lea.hbm %s1509_s4, 16 }
 0x41f   :  { %p785_p10 = scmp.ne.s32.totalorder %s1509_s4, %s784_s8  ;;  %p788_p11 = scmp.lt.u32.totalorder %s784_s8, %s1509_s4 }
 0x421   :  { %p790_p12 = pnand %p788_p11, %p785_p10 }
 0x423   :  { %793 = shalt.err (!%p790_p12)
}
 0x424   :  { %566 = dma.vmem_to_hbm [thread:$0]  %s564_s30, 16, %s1509_s4, [#allocation5]  }
 0x425   :  { %796 = dma.done.wait [#allocation5], 16  }
 0x426   :  { %797 = vsyncadd [#allocation5], 4294967280 }
 0x427   :  { %570 = vsyncpa [#allocation5], 1 }

</bundles_post_ra>
